<compile_context>
chip_gen: v7x
topology: tpu7x:2x2x1
jax: 0.10.0
libtpu: 0.0.40
codegen_flags: <defaults>
</compile_context>

<pallas_src>
import functools

import jax
import jax.numpy as jnp
from jax.experimental import pallas as pl
from jax.experimental.pallas import tpu as pltpu


def _lm_criterion_kernel(logits_ref, target_ref, mask_ref, out_ref, pick_acc,
                         *, n_rows, tile_rows, tile_v, lane_groups, multi_k):
    i = pl.program_id(0)          # row-tile axis ('parallel')
    k = pl.program_id(1)          # vocab-chunk axis ('arbitrary', innermost)

    tgt = target_ref[...]         # (tile_rows, 1) int32

    def finalize(picked):
        # picked: (tile_rows, L) f32; each row's lanes sum to logits[row, tgt[row]].
        msk = mask_ref[...]                                        # (tile_rows, 1)
        row = (jax.lax.broadcasted_iota(jnp.int32, (tile_rows, 1), 0)
               + i * tile_rows)
        # Rows past N are pipeline padding (unspecified data): select 0 via
        # where so even NaN garbage cannot poison the partial sum.
        loss = jnp.where(row < n_rows, -picked * msk, 0.0)
        out_ref[...] = jnp.broadcast_to(jnp.sum(loss), (1, 1, 128))

    if lane_groups == 0:
        # Direct path: single vocab chunk with tile_v == V (V % 128 != 0).
        logits = logits_ref[...].astype(jnp.float32)               # (tile_rows, V)
        col = jax.lax.broadcasted_iota(jnp.int32, logits.shape, 1)
        finalize(jnp.where(col == tgt, logits, 0.0))
        return

    # Lane-dense gather-by-compare: per-lane partials accumulate with VPU ops
    # only; compare the base lane iota against (tgt - chunk offset) rather than
    # rebuilding a full column iota each chunk.
    rel = tgt - k * tile_v if multi_k else tgt
    lane = jax.lax.broadcasted_iota(jnp.int32, (tile_rows, 128), 1)

    if multi_k:
        @pl.when(k == 0)
        def _():
            pick_acc[...] = jnp.zeros_like(pick_acc)
        acc = pick_acc[...]
    else:
        acc = jnp.zeros((tile_rows, 128), jnp.float32)

    for g in range(lane_groups):
        blk = logits_ref[:, g * 128:(g + 1) * 128]        # native dtype vregs
        hit = lane == (rel - g * 128)
        # Select in the native dtype (exact: at most one nonzero per row),
        # cast only the selected vreg to f32 before accumulating.
        acc = acc + jnp.where(hit, blk, 0.0).astype(jnp.float32)

    if multi_k:
        pick_acc[...] = acc        # dense (tile_rows, 128) store, no lane mask

        @pl.when(k == pl.num_programs(1) - 1)
        def _():
            finalize(acc)
    else:
        finalize(acc)


def _vmem_capacity_bytes():
    """Per-core VMEM capacity; conservative 64 MiB fallback (fits every chip)."""
    try:
        cap = getattr(pltpu.get_tpu_info(), "vmem_capacity_bytes", None)
        if cap:
            return int(cap)
    except Exception:
        pass
    return 64 * 1024 * 1024


def language_model_criterion(logits, target, mask, *, tile_rows=None, tile_v=None):
    """Masked NLL loss:  sum(-logits[n, target[n]] * mask[n]) / batch_size.

    logits: (B, T, V) log-probabilities (any float dtype; streamed natively).
    target: (B, >=T) integer class indices.
    mask:   (B, >=T) float mask.
    """
    B, T, V = logits.shape
    target = target[:, :T]
    mask = mask[:, :T]

    N = B * T
    logits_flat = logits.reshape(N, V)                       # keep native dtype
    target_flat = target.reshape(N, 1).astype(jnp.int32)
    mask_flat = mask.reshape(N, 1).astype(jnp.float32)

    itemsize = jnp.dtype(logits_flat.dtype).itemsize
    row_align = 16 if itemsize < 4 else 8                    # sub-32-bit packing

    # --- VMEM budget (per generation): request ~80% of physical capacity and
    # spend ~75% of that request on declared buffers, leaving headroom for
    # Mosaic internals and in-flight value temporaries.
    vmem_cap = _vmem_capacity_bytes()
    vmem_limit = min(int(vmem_cap * 0.8), vmem_cap - (8 << 20))
    budget = int(vmem_limit * 0.75)

    # --- Vocab handling: last-dim blocks must be a multiple of 128 or == V.
    V_eff = V
    if V % 128 != 0:
        # Single-chunk direct path; if even a minimum-height block cannot fit
        # (huge unaligned vocab), pad V to a multiple of 128 so it can be
        # lane-chunked (padded columns never match a valid target < V).
        direct_per_row = 2 * V * itemsize + 3 * V * 4 + 4096
        if tile_v is None and direct_per_row * row_align > budget:
            V_eff = ((V + 127) // 128) * 128
            logits_flat = jnp.pad(logits_flat, ((0, 0), (0, V_eff - V)))

    if tile_v is None:
        tile_v = min(V_eff, 8192) if V_eff % 128 == 0 else V_eff
    assert tile_v == V_eff or tile_v % 128 == 0, \
        "tile_v must be a multiple of 128 or the full vocab size"
    lane_groups = tile_v // 128 if tile_v % 128 == 0 else 0

    # --- Row tiling: large blocks amortize the ~0.35us/grid-step overhead.
    # Per-row estimate covers double-buffered logits, lane-padded target/mask
    # blocks, the (tile_rows, 128) f32 accumulator scratch, and temporaries.
    if lane_groups:
        per_row = 2 * tile_v * itemsize + 6 * 1024
    else:
        per_row = 2 * tile_v * itemsize + 3 * tile_v * 4 + 4096
    n_rows_pad = ((N + row_align - 1) // row_align) * row_align
    if tile_rows is None:
        tile_rows = budget // per_row
    tile_rows = max(row_align, min(int(tile_rows), n_rows_pad))
    tile_rows = max(row_align, (tile_rows // row_align) * row_align)
    # Give v7x's two TensorCores at least two row tiles to shard across.
    if pl.cdiv(N, tile_rows) < 2 and tile_rows > row_align:
        tile_rows = max(row_align, ((tile_rows // 2) // row_align) * row_align)

    grid = (pl.cdiv(N, tile_rows), pl.cdiv(V_eff, tile_v))
    multi_k = grid[1] > 1

    kernel = functools.partial(
        _lm_criterion_kernel, n_rows=N, tile_rows=tile_rows, tile_v=tile_v,
        lane_groups=lane_groups, multi_k=multi_k)

    partial_sums = pl.pallas_call(
        kernel,
        out_shape=jax.ShapeDtypeStruct((grid[0], 1, 128), jnp.float32),
        grid_spec=pltpu.PrefetchScalarGridSpec(
            num_scalar_prefetch=0,
            grid=grid,
            in_specs=[
                pl.BlockSpec((tile_rows, tile_v), lambda i, k: (i, k)),
                pl.BlockSpec((tile_rows, 1), lambda i, k: (i, 0)),
                pl.BlockSpec((tile_rows, 1), lambda i, k: (i, 0)),
            ],
            out_specs=pl.BlockSpec((1, 1, 128), lambda i, k: (i, 0, 0)),
            scratch_shapes=[pltpu.VMEM((tile_rows, 128), jnp.float32)],
        ),
        compiler_params=pltpu.CompilerParams(
            # Row tiles are independent (each writes its own partial sum) ->
            # 'parallel' lets v7x shard them across both TensorCores.
            dimension_semantics=("parallel", "arbitrary"),
            vmem_limit_bytes=int(vmem_limit),
        ),
    )(logits_flat, target_flat, mask_flat)

    # Each row tile wrote its partial sum broadcast across 128 lanes; lane 0
    # holds the value.  Final tiny reduction + batch normalization in XLA.
    return jnp.sum(partial_sums[:, 0, 0]) / jnp.float32(B)


def _reference(logits, target, mask):
    B, T, V = logits.shape
    tgt = target[:, :T].reshape(-1)
    msk = mask[:, :T].reshape(-1).astype(jnp.float32)
    lf = logits.reshape(-1, V)
    picked = jnp.take_along_axis(lf, tgt[:, None], axis=1)[:, 0].astype(jnp.float32)
    loss = -picked * (tgt != -100)
    return jnp.sum(loss * msk) / B


if __name__ == "__main__":
    key = jax.random.PRNGKey(0)

    # Case 1: small shapes matching the module's use (f32 log-probs), auto tiling.
    B, T, V = 2, 8, 128
    k1, k2, k3 = jax.random.split(key, 3)
    logits = jax.nn.log_softmax(jax.random.normal(k1, (B, T, V), jnp.float32), -1)
    # target / mask may have a longer time dim than logits (module slices them).
    target = jax.random.randint(k2, (B, T + 2), 0, V, dtype=jnp.int32)
    mask = (jax.random.uniform(k3, (B, T + 2)) > 0.3).astype(jnp.float32)

    out = language_model_criterion(logits, target, mask)
    jax.block_until_ready(out)
    ref = _reference(logits, target, mask)
    assert jnp.allclose(out, ref, rtol=1e-5, atol=1e-5), (out, ref)

    # Case 2: ragged N (B*T not a multiple of the row tile), multi-chunk vocab
    # accumulation, native bf16 streaming (f32 cast happens inside the kernel).
    B2, T2, V2 = 3, 7, 384
    k4, k5, k6 = jax.random.split(jax.random.PRNGKey(1), 3)
    logits2 = jax.nn.log_softmax(
        jax.random.normal(k4, (B2, T2, V2), jnp.float32), -1).astype(jnp.bfloat16)
    target2 = jax.random.randint(k5, (B2, T2 + 3), 0, V2, dtype=jnp.int32)
    mask2 = (jax.random.uniform(k6, (B2, T2 + 3)) > 0.4).astype(jnp.float32)

    out2 = language_model_criterion(logits2, target2, mask2,
                                    tile_rows=16, tile_v=128)
    jax.block_until_ready(out2)
    ref2 = _reference(logits2, target2, mask2)
    assert jnp.allclose(out2, ref2, rtol=1e-4, atol=1e-4), (out2, ref2)

    # Case 3: vocab not a multiple of 128 -> single-chunk direct path.
    B3, T3, V3 = 2, 5, 200
    k7, k8, k9 = jax.random.split(jax.random.PRNGKey(2), 3)
    logits3 = jax.nn.log_softmax(jax.random.normal(k7, (B3, T3, V3), jnp.float32), -1)
    target3 = jax.random.randint(k8, (B3, T3 + 1), 0, V3, dtype=jnp.int32)
    mask3 = (jax.random.uniform(k9, (B3, T3 + 1)) > 0.5).astype(jnp.float32)

    out3 = language_model_criterion(logits3, target3, mask3)
    jax.block_until_ready(out3)
    ref3 = _reference(logits3, target3, mask3)
    assert jnp.allclose(out3, ref3, rtol=1e-5, atol=1e-5), (out3, ref3)

    print("KERNEL_OK")
</pallas_src>

<mosaic_0001>
module attributes {stable_mosaic.version = 11 : i64} {
  func.func @_lm_criterion_kernel(%arg0: i32, %arg1: i32, %arg2: memref<8x128xf32, #tpu.memory_space<vmem>>, %arg3: memref<8x1xi32, #tpu.memory_space<vmem>>, %arg4: memref<8x1xf32, #tpu.memory_space<vmem>>, %arg5: memref<1x1x128xf32, #tpu.memory_space<vmem>>, %arg6: memref<8x128xf32, #tpu.memory_space<vmem>>) attributes {dimension_semantics = [#tpu.dimension_semantics<parallel>, #tpu.dimension_semantics<arbitrary>], iteration_bounds = array<i64: 2, 1>, scalar_prefetch = 0 : i64, scratch_operands = 1 : i64, tpu.core_type = #tpu.core_type<tc>, window_params = [{transform_indices = @transform_0, window_bounds = array<i64: 8, 128>}, {transform_indices = @transform_1, window_bounds = array<i64: 8, 1>}, {transform_indices = @transform_2, window_bounds = array<i64: 8, 1>}, {transform_indices = @transform_3, window_bounds = array<i64: 1, 1, 128>}]} {
    %c0 = arith.constant 0 : index
    %c0_0 = arith.constant 0 : index
    %0 = vector.load %arg3[%c0, %c0_0] : memref<8x1xi32, #tpu.memory_space<vmem>>, vector<8x1xi32>
    %1 = tpu.iota {dimensions = array<i32: 1>} : vector<8x128xi32>
    %cst = arith.constant 0.000000e+00 : f32
    %2 = vector.broadcast %cst : f32 to vector<8x128xf32>
    %c0_1 = arith.constant 0 : index
    %c0_2 = arith.constant 0 : index
    %3 = vector.load %arg2[%c0_1, %c0_2] : memref<8x128xf32, #tpu.memory_space<vmem>>, vector<8x128xf32>
    %c0_i32 = arith.constant 0 : i32
    %4 = vector.broadcast %c0_i32 : i32 to vector<8x1xi32>
    %5 = arith.subi %0, %4 : vector<8x1xi32>
    %6 = vector.broadcast %5 : vector<8x1xi32> to vector<8x128xi32>
    %7 = arith.cmpi eq, %1, %6 : vector<8x128xi32>
    %cst_3 = arith.constant 0.000000e+00 : f32
    %8 = vector.broadcast %cst_3 : f32 to vector<8x128xf32>
    %9 = arith.select %7, %3, %8 : vector<8x128xi1>, vector<8x128xf32>
    %10 = arith.addf %2, %9 : vector<8x128xf32>
    %c0_4 = arith.constant 0 : index
    %c0_5 = arith.constant 0 : index
    %11 = vector.load %arg4[%c0_4, %c0_5] : memref<8x1xf32, #tpu.memory_space<vmem>>, vector<8x1xf32>
    %12 = tpu.iota {dimensions = array<i32: 0>} : vector<8x1xi32>
    %c8_i32 = arith.constant 8 : i32
    %13 = arith.muli %arg0, %c8_i32 : i32
    %14 = vector.broadcast %13 : i32 to vector<8x1xi32>
    %15 = arith.addi %12, %14 : vector<8x1xi32>
    %c16_i32 = arith.constant 16 : i32
    %16 = vector.broadcast %c16_i32 : i32 to vector<8x1xi32>
    %17 = arith.cmpi slt, %15, %16 : vector<8x1xi32>
    %cst_6 = arith.constant 0.000000e+00 : f32
    %18 = vector.broadcast %cst_6 : f32 to vector<8x128xf32>
    %19 = arith.subf %18, %10 : vector<8x128xf32>
    %20 = vector.broadcast %11 : vector<8x1xf32> to vector<8x128xf32>
    %21 = arith.mulf %19, %20 : vector<8x128xf32>
    %cst_7 = arith.constant 0.000000e+00 : f32
    %22 = vector.shape_cast %17 : vector<8x1xi1> to vector<8x1xi1>
    %23 = vector.broadcast %22 : vector<8x1xi1> to vector<8x128xi1>
    %24 = vector.broadcast %cst_7 : f32 to vector<8x128xf32>
    %25 = arith.select %23, %21, %24 : vector<8x128xi1>, vector<8x128xf32>
    %26 = vector.shape_cast %25 : vector<8x128xf32> to vector<1x8x128xf32>
    %cst_8 = arith.constant dense<0.000000e+00> : vector<1xf32>
    %27 = vector.multi_reduction <add>, %26, %cst_8 [1, 2] : vector<1x8x128xf32> to vector<1xf32>
    %28 = vector.shape_cast %27 : vector<1xf32> to vector<1x1x1xf32>
    %29 = vector.extract %28[0, 0, 0] : f32 from vector<1x1x1xf32>
    %30 = vector.broadcast %29 : f32 to vector<1x1x128xf32>
    %c0_9 = arith.constant 0 : index
    %c0_10 = arith.constant 0 : index
    %c0_11 = arith.constant 0 : index
    %31 = vector.load %arg5[%c0_9, %c0_10, %c0_11] : memref<1x1x128xf32, #tpu.memory_space<vmem>>, vector<1x1x128xf32>
    tpu.vector_store %arg5[%c0_9, %c0_10, %c0_11], %30 {strides = array<i32>} : memref<1x1x128xf32, #tpu.memory_space<vmem>>, vector<1x1x128xf32>,
    return
  }
  func.func @transform_0(%arg0: i32, %arg1: i32) -> (i32, i32) {
    %c0_i32 = arith.constant 0 : i32
    return %arg0, %arg1 : i32, i32
  }
  func.func @transform_1(%arg0: i32, %arg1: i32) -> (i32, i32) {
    %c0_i32 = arith.constant 0 : i32
    %c0_i32_0 = arith.constant 0 : i32
    return %arg0, %c0_i32 : i32, i32
  }
  func.func @transform_2(%arg0: i32, %arg1: i32) -> (i32, i32) {
    %c0_i32 = arith.constant 0 : i32
    %c0_i32_0 = arith.constant 0 : i32
    return %arg0, %c0_i32 : i32, i32
  }
  func.func @transform_3(%arg0: i32, %arg1: i32) -> (i32, i32, i32) {
    %c0_i32 = arith.constant 0 : i32
    %c0_i32_0 = arith.constant 0 : i32
    %c0_i32_1 = arith.constant 0 : i32
    return %arg0, %c0_i32, %c0_i32_0 : i32, i32, i32
  }
}

</mosaic_0001>

<bundles_post_ra>
// kernel: tpu_custom_call.1
= control target key start
LH: loop header
LB: loop body
LE: loop exit
PB: predicated region body
PF: predicated region fallthrough
CT: control target
= control target key end

     0   :  { %8 = vsyncpa [#allocation4], 0  ;;  %s655_s0 = inlined_call_operand.vmem [shape: f32[16,128], index: 0, kind: input, shape index: {}]   ;;  %s656_s1 = inlined_call_operand.vmem [shape: s32[16,1], index: 1, kind: input, shape index: {}]   ;;  %s657_s2 = inlined_call_operand.vmem [shape: f32[16,1], index: 2, kind: input, shape index: {}]   ;;  %s658_s3 = inlined_call_operand.hbm [shape: f32[2,1,128], index: 3, kind: output, shape index: {}]  }
   0x1   :  { %10 = vsyncpa [#allocation4 + $0x1], 0  ;;  %s536_s12 = smov 0   ;;  %s538_s13 = smov 0  }
   0x2   :  { %s540_s14 = smov 0   ;;  %s542_s15 = smov 0  }
   0x3   :  { %s544_s16 = smov 0   ;;  %s546_s17 = smov 0  }
   0x4 LB: > { %s363_s18 = sadd.s32 4294967295, %s512_s17   ;;  %s364_s19 = sadd.s32 4294967294, %s512_s17   ;;  %s512_s17 = sphi %s546_s17, %s16_s17   ;;  %s508_s16 = sphi %s544_s16, %s665_s16   ;;  %s504_s15 = sphi %s542_s15, %s664_s15   ;;  %s500_s14 = sphi %s540_s14, %s663_s14   ;;  %s496_s13 = sphi %s538_s13, %s662_s13   ;;  %s492_s12 = sphi %s536_s12, %s661_s12  }
   0x5   : > { %s28_s20 = sadd.s32 1, %s508_s16  ;;  %s115_s21 = sadd.s32 1, %s500_s14 }
   0x6   : > { %p30_p0 = scmp.ge.s32.totalorder %s28_s20, 2  ;;  %p125_p1 = scmp.ne.s32.totalorder %s500_s14, %s496_s13 }
   0x7   : > { %p126_p2 = scmp.eq.s32.totalorder %s363_s18, 1  ;;  %p131_p3 = scmp.ne.s32.totalorder %s496_s13, %s492_s12 }
   0x8   : > { %s667_s20 = smov (%p30_p0, %s28_s20), 0  ;;  %p132_p5 = scmp.eq.s32.totalorder %s364_s19, 1 }
   0x9   : > { %p576_p4 = por %p126_p2, %p125_p1  ;;  %s112_s23 = ssub.s32 %s508_s16, %s667_s20 }
   0xa   : > { %p367_p6 = scmp.ge.s32.totalorder %s512_s17, 1  ;;  %p113_p7 = scmp.eq.s32.totalorder %s112_s23, 0 }
   0xb   : > { %p583_p8 = por %p132_p5, %p131_p3  ;;  %p174_p9 = scmp.lt.s32.totalorder %s512_s17, 3 }
   0xc   : > { %s589_s25 = scalar_select %p113_p7, %s500_s14, %s115_s21  }
   0xd   : > { %p175_p10 = pnand %p367_p6, %p174_p9 }
   0xe   : > { %p207_p11 = scmp.lt.s32.totalorder (!%p175_p10), %s504_s15, 1  ;;  %v514_v0 = vmov (!%p175_p10), 0   ;;  %v223_v3 = vlaneseq (!%p175_p10)  ;;  %s371_s7 = sshll.u32 (!%p175_p10), %s504_s15, 3 }
   0xf   : > { %178 = sbr.rel (%p175_p10) target bundleno = 381 (0x17d), region = 32  ;;  %433 = vset.pattern.permute.xlu0 (!%p175_p10), %v514_v0  ;;  %v236_v6 = vstv (!%p175_p10), %s371_s7  ;;  %s205_s11 = sand.u32 (!%p175_p10), 1, %s496_s13  }
  0x10   : > { %v234_v4 = vshrl.u32 (!%p175_p10), %v223_v3, 7  ;;  %v224_v5 = vand.u32 (!%p175_p10), 127, %v223_v3  ;;  %s206_s18 = scalar_lea.vmem (!%p175_p10), [#allocation3], %s205_s11  ;;  %s372_s21 = sshll.u32 (!%p175_p10), %s504_s15, 4 }
  0x11   : > { %s273_s19 = sshll.u32 (!%p175_p10), %s206_s18, 4  ;;  %s610_s28 = scalar_lea.hbm (!%p175_p10), %s658_s3, %s372_s21  ;;  %s605_s19 = int_to_ptr.vmem [resolvable:$true] %s273_s19 }
  0x12   : > { %v237_v9 = vadd.s32 (!%p175_p10), %v236_v6, %v234_v4  ;;  %s261_s29 = scalar_lea.sflag (!%p175_p10), [#allocation4], %s205_s11 }
  0x14   : > { %vm238_vm1 = vcmp.lt.s32.totalorder (!%p175_p10), %v237_v9, 16 }
  0x16   : > { %s208_s26 = scalar_select %p207_p11, %s504_s15, 1 }
  0x17   : > { %s515_s15 = smov [#allocation3]  }
  0x18   : > { %s368_s27 = sshll.u32 %s208_s26, 3  ;;  %s438_s4 = sshll.u32 %s515_s15, 4  ;;  %s439_s4 = int_to_ptr.vmem [resolvable:$false] %s438_s4 }
  0x19   : > { %s217_s30 = scalar_lea.vmem %s656_s1, %s368_s27  ;;  %s221_s6 = scalar_lea.vmem %s657_s2, %s368_s27 }
  0x1a   : > { %v222_v1 = vld [vmem:[%s217_s30] sm:$0xff]  ;;  %s213_s10 = scalar_lea.vmem %s655_s0, %s368_s27  ;;  %s434_s30 = scalar_lea.vmem %s605_s19, 16 }
  0x1b   : > { %227 = vperm.xlu0 %433, %v222_v1   ;;  %v232_v2 = vld [vmem:[%s221_s6] sm:$0xff]  ;;  %p435_p12 = scmp.ne.s32.totalorder %s605_s19, %s434_s30  ;;  %s440_s5 = scalar_lea.vmem %s439_s4, 32 }
  0x1c   : > { %v225_v7 = vld [vmem:[%s213_s10] sm:$0xff]  ;;  %p441_p1 = scmp.lt.s32.totalorder %s605_s19, %s439_s4  ;;  %p442_p2 = scmp.lt.s32.totalorder %s440_s5, %s434_s30 }
  0x1d   : > { %p436_p13 = pnand %p435_p12, %p576_p4 }
  0x1e   : > { %p443_p3 = por %p442_p2, %p441_p1 }
  0x1f   : > { %242 = vperm.xlu0 %433, %v232_v2   ;;  %p437_p0 = pneg %p436_p13 }
  0x21   : > { %p444_p5 = pnand %p443_p3, %p437_p0 }
  0x9a   : > { %v228_v8 = vpop.permute.xlu0 %227 }
  0x9b   : > { %vm229_vm0 = vcmp.eq.s32.totalorder %v224_v5, %v228_v8 }
  0x9c   : > { %v230_v10 = vsel %vm229_vm0, %v225_v7, 0.0 }
  0x9d   : > { %v239_v11 = vsub.f32 0.0, %v230_v10 }
  0x9e   : > { %v243_v12 = vpop.permute.xlu0 %242 }
  0x9f   : > { %v245_v13 = vmul.f32 %v243_v12, %v239_v11 }
  0xa1   : > { %v248_v14 = vsel %vm238_vm1, %v245_v13, 0.0 }
  0xa2   : > { %249 = vadd.xlane.f32.xlu1 %v248_v14 }
 0x12f   : > { %v250_v15 = vpop.xlane.xlu1 %249 }
 0x130   : > { %v251_v16 = vrot.slane %v250_v15, 4 }
 0x132   : > { %v252_v17 = vadd.f32 %v251_v16, %v250_v15 }
 0x134   : > { %v253_v18 = vrot.slane %v252_v17, 2 }
 0x136   : > { %v254_v19 = vadd.f32 %v253_v18, %v252_v17 }
 0x138   : > { %v255_v20 = vrot.slane %v254_v19, 1 }
 0x13a   : > { %v256_v21 = vadd.f32 %v255_v20, %v254_v19 }
 0x13c   : > { %375 = vpush %v256_v21 }
 0x16d   : > { %s376_s23 = spop %375 }
 0x16e   : > { %v258_v22 = vstv %s376_s23 }
 0x16f   : > { %259 = vst [vmem:[%s206_s18] sm:$0x1] %v258_v22 }
 0x170   : > { %447 = shalt.err (!%p444_p5)
}
 0x171   : > { %s448_s6 = scalar_lea.hbm %s610_s28, 16  ;;  %s452_s9 = scalar_lea.hbm %s658_s3, 32 }
 0x172   : > { %p449_p6 = scmp.ne.s32.totalorder %s610_s28, %s448_s6  ;;  %p453_p10 = scmp.lt.u32.totalorder %s610_s28, %s658_s3 }
 0x173   : > { %p454_p11 = scmp.lt.u32.totalorder %s452_s9, %s448_s6  ;;  %p456_p13 = scmp.lt.u32.totalorder %s448_s6, %s610_s28 }
 0x174   : > { %p450_p7 = pnand %p449_p6, %p576_p4 }
 0x175   : > { %p455_p12 = por %p454_p11, %p453_p10 }
 0x176   : > { %p451_p9 = pneg %p450_p7 }
 0x177   : > { %p457_p0 = por %p456_p13, %p455_p12 }
 0x179   : > { %p458_p1 = pnand %p457_p0, %p451_p9 }
 0x17b   : > { %461 = shalt.err (!%p458_p1)
}
 0x17c   : > { %377 = dma.vmem_to_hbm [thread:$0]  (%p576_p4), %s605_s19, 16, %s610_s28, %s261_s29  }
 0x17d PF: > { %p383_p2 = scmp.ge.s32.totalorder %s512_s17, 2  ;;  %s285_s18 = sand.u32 1, %s492_s12  }
 0x17e   : > { %s286_s21 = scalar_lea.sflag [#allocation4], %s285_s18 }
 0x17f   : > { %p380_p3 = pnand %p383_p2, %p583_p8 }
 0x181   : > { %487 = dma.done.wait (!%p380_p3), %s286_s21, 16  }
 0x182   : > { %489 = vsyncadd (!%p380_p3), %s286_s21, 4294967280  ;;  %s16_s17 = sadd.s32 1, %s512_s17   ;;  %s661_s12 = smov %s496_s13 }
 0x183   : > { %p13_p5 = scmp.ge.s32.totalorder %s16_s17, 4   ;;  %s662_s13 = smov %s500_s14 }
 0x184   : > { %s663_s14 = smov %s589_s25  ;;  %s664_s15 = smov %s508_s16 }
 0x185   : > { %s665_s16 = smov %s667_s20  ;;  %15 = sbr.rel (!%p13_p5) target bundleno = 4 (0x4), region = 73 }
 0x18c   :  { %290 = vsyncpa [#allocation4], 1 }
 0x18d   :  { %292 = vsyncpa [#allocation4 + $0x1], 1 }

</bundles_post_ra>
